<compile_context>
chip_gen: v7x
topology: tpu7x:2x2x1
jax: 0.10.0
libtpu: 0.0.40
codegen_flags: <defaults>
</compile_context>

<pallas_src>
import functools

import jax
import jax.numpy as jnp
from jax.experimental import pallas as pl
from jax.experimental.pallas import tpu as pltpu


def _conv1x1_kernel(w_ref, x_ref, o_ref, *, use_mxu, use_bf16_mxu):
    """Per-step 1x1 conv over a block of images and a lane-dense spatial tile.

    w_ref: (O, C)            full weight, constant block index across the grid
    x_ref: (B_blk, C, TS)    channel-major spatial tiles (lane-dense)
    o_ref: (B_blk, O, TS)    output tiles (lane-dense)
    """
    w = w_ref[...]
    B_blk = x_ref.shape[0]
    C = x_ref.shape[1]

    for b in range(B_blk):          # static, small
        xb = x_ref[b]               # (C, TS)
        if use_mxu:
            if use_bf16_mxu:
                # Compute-bound regime only (large C and O): bf16 inputs with
                # f32 accumulation recover 2-4x MXU throughput on v6e/v7x.
                yb = jnp.dot(w.astype(jnp.bfloat16), xb.astype(jnp.bfloat16),
                             preferred_element_type=jnp.float32)
            else:
                yb = jnp.dot(w, xb, preferred_element_type=jnp.float32)
        else:
            # Tiny contraction (C <= 8): C broadcast multiplies on the VPU,
            # tree-reduced (not a serial chain), accumulated in float32.
            parts = [
                w[:, c:c + 1].astype(jnp.float32)
                * xb[c:c + 1, :].astype(jnp.float32)
                for c in range(C)
            ]
            while len(parts) > 1:
                nxt = []
                for i in range(0, len(parts) - 1, 2):
                    nxt.append(parts[i] + parts[i + 1])
                if len(parts) % 2 == 1:
                    nxt.append(parts[-1])
                parts = nxt
            yb = parts[0]
        o_ref[b] = yb.astype(o_ref.dtype)


def conv1x1_pallas(x_nchw, w_oc):
    """1x1 conv (bias=False) on NCHW input.  x: (N, C, H, W), w: (O, C)."""
    N, C, H, W = x_nchw.shape
    O = w_oc.shape[0]
    S = H * W

    # NCHW -> (N, C, H*W): contiguous merge of the trailing dims (free reshape,
    # no transpose).  Spatial axis = lane axis -> lane-dense in/out tiles.
    x3 = x_nchw.reshape(N, C, S)

    LANE = 128
    itemsize = 4  # float32
    bytes_per_col = (C + O) * itemsize      # in + out bytes per spatial column

    # Generation-aware VMEM budget for double-buffered activation tiles.
    try:
        vmem_cap = int(pltpu.get_tpu_info().vmem_capacity_bytes)
    except Exception:
        vmem_cap = 64 * 1024 * 1024         # conservative (v7x-class)
    if vmem_cap <= 64 * 1024 * 1024:
        vmem_budget = 20 * 1024 * 1024      # v7x: 64 MiB physical, stay modest
    else:
        vmem_budget = 40 * 1024 * 1024      # v5e/v6e: 128 MiB physical

    target_bytes = 2 * 1024 * 1024          # ~2 MiB of HBM traffic per grid step

    # Spatial tile: multiple of 128 (or the full spatial dim when S < 128),
    # sized by the per-step byte target and the VMEM budget.
    if S >= LANE:
        s_floor = (S // LANE) * LANE
        want = max(LANE, (target_bytes // bytes_per_col) // LANE * LANE)
        cap = max(LANE, (vmem_budget // (2 * bytes_per_col)) // LANE * LANE)
        tile_S = min(want, cap, s_floor)
    else:
        tile_S = S                          # full-dim block (always legal)

    # Batch blocking: if one spatial tile is still far below the byte target
    # (tiny C/O or tiny images), pack several images per grid step.
    step_bytes = max(1, tile_S * bytes_per_col)
    B_blk = 1
    if step_bytes < target_bytes:
        B_blk = min(N, max(1, target_bytes // step_bytes))
        B_cap = max(1, vmem_budget // (2 * step_bytes))
        B_blk = min(B_blk, B_cap)

    # Guarantee >= 4 grid steps (>= 2 per TensorCore on v7x) so both cores get
    # work and adjacent steps' DMAs overlap.
    def n_steps(b_blk, t_s):
        return pl.cdiv(N, b_blk) * pl.cdiv(S, t_s)

    while n_steps(B_blk, tile_S) < 4 and B_blk > 1:
        B_blk = max(1, B_blk // 2)
    while n_steps(B_blk, tile_S) < 4 and S >= LANE and tile_S > LANE:
        tile_S = max(LANE, (tile_S // 2) // LANE * LANE)

    grid = (pl.cdiv(N, B_blk), pl.cdiv(S, tile_S))

    use_mxu = C >= 8
    # bf16 MXU inputs only in the clearly compute-bound regime (keeps small /
    # memory-bound cases bit-accurate in f32).
    use_bf16_mxu = bool(use_mxu and C >= 512 and O >= 512
                        and x3.dtype == jnp.float32)

    kernel = functools.partial(_conv1x1_kernel, use_mxu=use_mxu,
                               use_bf16_mxu=use_bf16_mxu)

    cost = pl.CostEstimate(
        flops=2 * N * O * C * S,
        transcendentals=0,
        bytes_accessed=(N * C * S + N * O * S + O * C) * itemsize,
    )

    # Actual VMEM need: double-buffered in/out tiles + double-buffered weight.
    need = 2 * B_blk * tile_S * bytes_per_col + 2 * O * C * itemsize
    vmem_limit = int(min(vmem_cap - 8 * 1024 * 1024,
                         max(need + 4 * 1024 * 1024, 16 * 1024 * 1024)))

    out = pl.pallas_call(
        kernel,
        out_shape=jax.ShapeDtypeStruct((N, O, S), x3.dtype),
        grid_spec=pltpu.PrefetchScalarGridSpec(
            num_scalar_prefetch=0,
            grid=grid,
            in_specs=[
                # Weight: tiny, constant block index -> fetched once and kept
                # resident by the pipeline (no re-DMA per step).
                pl.BlockSpec((O, C), lambda n, s: (0, 0)),
                # Activations: a block of B_blk images x one lane-dense tile.
                pl.BlockSpec((B_blk, C, tile_S), lambda n, s: (n, 0, s)),
            ],
            out_specs=pl.BlockSpec((B_blk, O, tile_S), lambda n, s: (n, 0, s)),
        ),
        compiler_params=pltpu.CompilerParams(
            dimension_semantics=("parallel", "parallel"),
            vmem_limit_bytes=vmem_limit,
        ),
        cost_estimate=cost,
    )(w_oc, x3)

    return out.reshape(N, O, H, W)


class TestLayerPallas:
    """JAX/Pallas equivalent of the PyTorch test_layer module."""

    def __init__(self, inc, ouc, key):
        k_fc, k_cn = jax.random.split(key)
        # nn.Linear(inc, ouc, bias=False): weight (ouc, inc) -- unused in forward
        bound = 1.0 / (inc ** 0.5)
        self.fc_weight = jax.random.uniform(
            k_fc, (ouc, inc), jnp.float32, -bound, bound
        )
        # nn.Conv2d(inc, ouc, 1, bias=False): weight (ouc, inc, 1, 1)
        self.cn_weight = jax.random.uniform(
            k_cn, (ouc, inc, 1, 1), jnp.float32, -bound, bound
        )

    def __call__(self, x_nchw):
        w_oc = self.cn_weight[:, :, 0, 0]   # (O, C)
        return conv1x1_pallas(x_nchw, w_oc)


if __name__ == "__main__":
    key = jax.random.PRNGKey(0)
    k_param, k_x = jax.random.split(key)

    N, C, H, W = 2, 4, 16, 16
    OUC = 8

    layer = TestLayerPallas(C, OUC, k_param)
    x = jax.random.normal(k_x, (N, C, H, W), dtype=jnp.float32)

    y = layer(x)
    y = jax.block_until_ready(y)

    # sanity check against plain-JAX reference (einsum == 1x1 conv, bias=False)
    w_oc = layer.cn_weight[:, :, 0, 0]
    y_ref = jnp.einsum("nchw,oc->nohw", x, w_oc)
    assert y.shape == (N, OUC, H, W)
    assert jnp.allclose(y, y_ref, atol=1e-5), "mismatch vs reference"

    print("KERNEL_OK")
</pallas_src>

<mosaic_0001>
module attributes {stable_mosaic.version = 11 : i64} {
  func.func @_conv1x1_kernel(%arg0: i32, %arg1: i32, %arg2: memref<8x4xf32, #tpu.memory_space<vmem>>, %arg3: memref<1x4x128xf32, #tpu.memory_space<vmem>>, %arg4: memref<1x8x128xf32, #tpu.memory_space<vmem>>) attributes {dimension_semantics = [#tpu.dimension_semantics<parallel>, #tpu.dimension_semantics<parallel>], iteration_bounds = array<i64: 2, 2>, scalar_prefetch = 0 : i64, scratch_operands = 0 : i64, tpu.core_type = #tpu.core_type<tc>, window_params = [{pipeline_mode = #tpu.pipeline_mode<synchronous>, transform_indices = @transform_0, window_bounds = array<i64: 8, 4>}, {transform_indices = @transform_1, window_bounds = array<i64: 1, 4, 128>}, {transform_indices = @transform_2, window_bounds = array<i64: 1, 8, 128>}]} {
    %c0 = arith.constant 0 : index
    %c0_0 = arith.constant 0 : index
    %0 = vector.load %arg2[%c0, %c0_0] : memref<8x4xf32, #tpu.memory_space<vmem>>, vector<8x4xf32>
    %c0_1 = arith.constant 0 : index
    %c0_2 = arith.constant 0 : index
    %c0_3 = arith.constant 0 : index
    %1 = vector.load %arg3[%c0_1, %c0_2, %c0_3] : memref<1x4x128xf32, #tpu.memory_space<vmem>>, vector<1x4x128xf32>
    %2 = vector.shape_cast %1 : vector<1x4x128xf32> to vector<4x128xf32>
    %3 = vector.extract_strided_slice %0 {offsets = [0, 0], sizes = [8, 1], strides = [1, 1]} : vector<8x4xf32> to vector<8x1xf32>
    %4 = vector.extract_strided_slice %2 {offsets = [0, 0], sizes = [1, 128], strides = [1, 1]} : vector<4x128xf32> to vector<1x128xf32>
    %5 = vector.broadcast %3 : vector<8x1xf32> to vector<8x128xf32>
    %6 = vector.broadcast %4 : vector<1x128xf32> to vector<8x128xf32>
    %7 = arith.mulf %5, %6 : vector<8x128xf32>
    %8 = vector.extract_strided_slice %0 {offsets = [0, 1], sizes = [8, 1], strides = [1, 1]} : vector<8x4xf32> to vector<8x1xf32>
    %9 = vector.extract_strided_slice %2 {offsets = [1, 0], sizes = [1, 128], strides = [1, 1]} : vector<4x128xf32> to vector<1x128xf32>
    %10 = vector.broadcast %8 : vector<8x1xf32> to vector<8x128xf32>
    %11 = vector.broadcast %9 : vector<1x128xf32> to vector<8x128xf32>
    %12 = arith.mulf %10, %11 : vector<8x128xf32>
    %13 = vector.extract_strided_slice %0 {offsets = [0, 2], sizes = [8, 1], strides = [1, 1]} : vector<8x4xf32> to vector<8x1xf32>
    %14 = vector.extract_strided_slice %2 {offsets = [2, 0], sizes = [1, 128], strides = [1, 1]} : vector<4x128xf32> to vector<1x128xf32>
    %15 = vector.broadcast %13 : vector<8x1xf32> to vector<8x128xf32>
    %16 = vector.broadcast %14 : vector<1x128xf32> to vector<8x128xf32>
    %17 = arith.mulf %15, %16 : vector<8x128xf32>
    %18 = vector.extract_strided_slice %0 {offsets = [0, 3], sizes = [8, 1], strides = [1, 1]} : vector<8x4xf32> to vector<8x1xf32>
    %19 = vector.extract_strided_slice %2 {offsets = [3, 0], sizes = [1, 128], strides = [1, 1]} : vector<4x128xf32> to vector<1x128xf32>
    %20 = vector.broadcast %18 : vector<8x1xf32> to vector<8x128xf32>
    %21 = vector.broadcast %19 : vector<1x128xf32> to vector<8x128xf32>
    %22 = arith.mulf %20, %21 : vector<8x128xf32>
    %23 = arith.addf %7, %12 : vector<8x128xf32>
    %24 = arith.addf %17, %22 : vector<8x128xf32>
    %25 = arith.addf %23, %24 : vector<8x128xf32>
    %c0_4 = arith.constant 0 : index
    %c0_5 = arith.constant 0 : index
    %c0_6 = arith.constant 0 : index
    %26 = vector.load %arg4[%c0_4, %c0_5, %c0_6] : memref<1x8x128xf32, #tpu.memory_space<vmem>>, vector<1x8x128xf32>
    %27 = vector.shape_cast %26 : vector<1x8x128xf32> to vector<8x128xf32>
    %28 = vector.shape_cast %25 : vector<8x128xf32> to vector<1x8x128xf32>
    tpu.vector_store %arg4[%c0_4, %c0_5, %c0_6], %28 {strides = array<i32>} : memref<1x8x128xf32, #tpu.memory_space<vmem>>, vector<1x8x128xf32>,
    return
  }
  func.func @transform_0(%arg0: i32, %arg1: i32) -> (i32, i32) {
    %c0_i32 = arith.constant 0 : i32
    %c0_i32_0 = arith.constant 0 : i32
    %c0_i32_1 = arith.constant 0 : i32
    return %c0_i32, %c0_i32_0 : i32, i32
  }
  func.func @transform_1(%arg0: i32, %arg1: i32) -> (i32, i32, i32) {
    %c0_i32 = arith.constant 0 : i32
    %c0_i32_0 = arith.constant 0 : i32
    return %arg0, %c0_i32, %arg1 : i32, i32, i32
  }
  func.func @transform_2(%arg0: i32, %arg1: i32) -> (i32, i32, i32) {
    %c0_i32 = arith.constant 0 : i32
    %c0_i32_0 = arith.constant 0 : i32
    return %arg0, %c0_i32, %arg1 : i32, i32, i32
  }
}

</mosaic_0001>

<bundles_post_ra>
// kernel: tpu_custom_call.1
= control target key start
LH: loop header
LB: loop body
LE: loop exit
PB: predicated region body
PF: predicated region fallthrough
CT: control target
= control target key end

     0   :  { %7 = vsyncpa [#allocation3], 0  ;;  %s772_s0 = inlined_call_operand.vmem [shape: f32[8,4], index: 0, kind: input, shape index: {}]   ;;  %s773_s1 = inlined_call_operand.hbm [shape: f32[2,4,256], index: 1, kind: input, shape index: {}]   ;;  %s774_s2 = inlined_call_operand.hbm [shape: f32[2,8,256], index: 2, kind: output, shape index: {}]  }
   0x1   :  { %9 = vsyncpa [#allocation3 + $0x1], 0 }
   0x2   :  { %10 = vsyncpa [#allocation4], 0 }
   0x3   :  { %12 = vsyncpa [#allocation4 + $0x1], 0  ;;  %s574_s9 = smov 0   ;;  %s576_s10 = smov 0  }
   0x4   :  { %s578_s11 = smov 0   ;;  %s580_s12 = smov 0  }
   0x5   :  { %s582_s13 = smov 0   ;;  %s584_s14 = smov 0  }
   0x6   :  { %s586_s15 = smov 0   ;;  %s588_s16 = smov 0  }
   0x7 LB: > { %s321_s17 = sadd.s32 4294967295, %s551_s16   ;;  %s322_s18 = sadd.s32 4294967294, %s551_s16   ;;  %s551_s16 = sphi %s588_s16, %s18_s16   ;;  %s547_s15 = sphi %s586_s15, %s791_s15   ;;  %s543_s14 = sphi %s584_s14, %s790_s14   ;;  %s539_s13 = sphi %s582_s13, %s789_s13   ;;  %s535_s12 = sphi %s580_s12, %s788_s12   ;;  %s531_s11 = sphi %s578_s11, %s787_s11   ;;  %s527_s10 = sphi %s576_s10, %s786_s10   ;;  %s523_s9 = sphi %s574_s9, %s785_s9  }
   0x8   : > { %s27_s19 = sadd.s32 1, %s543_s14  ;;  %s30_s20 = sadd.s32 1, %s547_s15 }
   0x9   : > { %p28_p0 = scmp.ge.s32.totalorder %s27_s19, 2  ;;  %s60_s21 = sadd.s32 1, %s531_s11 }
   0xa   : > { %p67_p1 = scmp.ne.s32.totalorder %s531_s11, %s527_s10  ;;  %p68_p2 = scmp.eq.s32.totalorder %s551_s16, 0 }
   0xb   : > { %s793_s19 = smov (%p28_p0, %s27_s19), 0  ;;  %s795_s20 = smov (!%p28_p0, %s30_s20), %s547_s15 }
   0xc   : > { %s56_s22 = ssub.s32 %s543_s14, %s793_s19  ;;  %p627_p3 = por %p68_p2, %p67_p1 }
   0xd   : > { %p32_p4 = scmp.ge.s32.totalorder %s795_s20, 2  ;;  %p73_p5 = scmp.ne.s32.totalorder %s527_s10, %s523_s9 }
   0xe   : > { %p74_p6 = scmp.eq.s32.totalorder %s321_s17, 0  ;;  %p99_p7 = scmp.eq.s32.totalorder %s321_s17, 3 }
   0xf   : > { %s797_s20 = smov (%p32_p4, %s795_s20), 0  ;;  %p105_p10 = scmp.eq.s32.totalorder %s322_s18, 3 }
  0x10   : > { %p635_p8 = por %p74_p6, %p73_p5  ;;  %p639_p9 = por %p99_p7, %p67_p1 }
  0x11   : > { %s55_s26 = ssub.s32 %s547_s15, %s797_s20  ;;  %p645_p12 = por %p105_p10, %p73_p5 }
  0x12   : > { %s778_s25 = scalar_select %p639_p9, 1, 0 }
  0x13   : > { %s57_s27 = sor.u32 %s56_s22, %s55_s26  ;;  %p348_p13 = scmp.lt.s32.totalorder %s551_s16, 4 }
  0x14   : > { %p58_p11 = scmp.eq.s32.totalorder %s57_s27, 0  ;;  %s128_s29 = sand.u32 1, %s531_s11  }
  0x15   : > { %s779_s28 = scalar_select %p645_p12, 1, 0 }
  0x16   : > { %s652_s30 = scalar_select %p58_p11, %s531_s11, %s60_s21  }
  0x17   : > { %s325_s3 = sshll.u32 %s128_s29, 2  ;;  %s326_s4 = sshll.u32 %s547_s15, 1 }
  0x18   : > { %s137_s5 = sadd.s32 %s543_s14, %s326_s4  ;;  %s132_s6 = scalar_lea.vmem [#allocation2], %s325_s3 }
  0x19   : > { %s141_s7 = sshll.u32 %s132_s6, 4  ;;  %s327_s8 = sshll.u32 %s137_s5, 6  ;;  %s656_s7 = int_to_ptr.vmem [resolvable:$true] %s141_s7 }
  0x1a   : > { %s661_s22 = scalar_lea.hbm %s773_s1, %s327_s8  ;;  %p665_p0 = pnand %p348_p13, %p627_p3 }
  0x1b   : > { %s129_s26 = scalar_lea.sflag [#allocation3], %s128_s29  ;;  %s423_s27 = scalar_lea.hbm %s661_s22, 64 }
  0x1c   : > { %p424_p4 = scmp.ne.s32.totalorder %s661_s22, %s423_s27  ;;  %p425_p5 = pneg %p665_p0 }
  0x1d   : > { %s428_s4 = scalar_lea.hbm %s773_s1, 256  ;;  %p429_p3 = scmp.lt.u32.totalorder %s661_s22, %s773_s1 }
  0x1e   : > { %p426_p6 = pnand %p425_p5, %p424_p4  ;;  %p430_p10 = scmp.lt.u32.totalorder %s428_s4, %s423_s27 }
  0x1f   : > { %p432_p13 = scmp.lt.u32.totalorder %s423_s27, %s661_s22 }
  0x20   : > { %p427_p7 = pneg %p426_p6  ;;  %p431_p11 = por %p430_p10, %p429_p3 }
  0x22   : > { %p433_p1 = por %p432_p13, %p431_p11 }
  0x24   : > { %p434_p2 = pnand %p433_p1, %p427_p7 }
  0x26   : > { %437 = shalt.err (!%p434_p2)
}
  0x27   : > { %s438_s29 = scalar_lea.vmem %s656_s7, 64  ;;  %s553_s8 = smov [#allocation2]  }
  0x28   : > { %p439_p4 = scmp.ne.s32.totalorder %s656_s7, %s438_s29  ;;  %s443_s17 = sshll.u32 %s553_s8, 4  ;;  %s444_s17 = int_to_ptr.vmem [resolvable:$false] %s443_s17 }
  0x29   : > { %s445_s18 = scalar_lea.vmem %s444_s17, 128  ;;  %p446_p9 = scmp.lt.s32.totalorder %s656_s7, %s444_s17 }
  0x2a   : > { %p441_p6 = pnand %p439_p4, %p425_p5  ;;  %p447_p3 = scmp.lt.s32.totalorder %s445_s18, %s438_s29 }
  0x2c   : > { %p442_p12 = pneg %p441_p6  ;;  %p448_p10 = por %p447_p3, %p446_p9 }
  0x2e   : > { %p449_p11 = pnand %p448_p10, %p442_p12 }
  0x30   : > { %452 = shalt.err (!%p449_p11)
}
  0x31   : > { %343 = dma.hbm_to_vmem [thread:$0]  (!%p665_p0), %s661_s22, 64, %s656_s7, %s129_s26  }
  0x32   : > { %p781_p1 = scmp.lt.s32.totalorder %s551_s16, 5  ;;  %p782_p2 = scmp.ge.s32.totalorder %s551_s16, 1 }
  0x34   : > { %p147_p5 = pnand %p782_p2, %p781_p1 }
  0x35   : > { %s701_s27 = sand.u32 (!%p147_p5), 1, %s527_s10  }
  0x36   : > { %150 = sbr.rel (%p147_p5) target bundleno = 217 (0xd9), region = 28  ;;  %s329_s23 = sshll.u32 (!%p147_p5), %s701_s27, 2 }
  0x37   : > { %s153_s3 = scalar_lea.sflag (!%p147_p5), [#allocation3], %s701_s27  ;;  %s156_s4 = scalar_lea.vmem (!%p147_p5), [#allocation2], %s329_s23 }
  0x3d   : > { %514 = dma.done.wait (%p635_p8), %s153_s3, 64  }
  0x3e   : > { %516 = vsyncadd (%p635_p8), %s153_s3, 4294967232  ;;  %v554_v0 = vmov 2   ;;  %v555_v1 = vmov 0   ;;  %v177_v2 = vld [vmem:[%s772_s0] sm:$0xff]  ;;  %v556_v3 = vmov 3   ;;  %v557_v4 = vmov 1  }
  0x3f   : > { %420 = vset.pattern.permute.xlu1 %v554_v0  ;;  %418 = vset.pattern.permute.xlu0 %v555_v1  ;;  %v184_v5 = vlaneseq  ;;  %v178_v11 = vld [vmem:[%s156_s4] sm:$0xf]  ;;  %s330_s24 = sshll.u32 %s701_s27, 3  ;;  %s332_s21 = sshll.u32 %s539_s13, 1 }
  0x40   : > { %199 = vperm.xlu1 %420, %v177_v2   ;;  %181 = vperm.xlu0 %418, %v177_v2   ;;  %s232_s26 = sadd.s32 %s535_s12, %s332_s21  ;;  %s176_s6 = scalar_lea.vmem [#allocation5], %s330_s24 }
  0x41   : > { %v185_v6 = vshrl.u32 %v184_v5, 7  ;;  %s333_s5 = sshll.u32 %s232_s26, 7  ;;  %s236_s29 = sshll.u32 %s176_s6, 4  ;;  %s720_s29 = int_to_ptr.vmem [resolvable:$true] %s236_s29 }
  0x42   : > { %s718_s17 = scalar_lea.hbm %s774_s2, %s333_s5  ;;  %s221_s12 = scalar_lea.sflag [#allocation4], %s701_s27 }
  0x43   : > { %v204_v7 = vsub.s32 2, %v185_v6  ;;  %v186_v8 = vsub.s32 0, %v185_v6  ;;  %v213_v9 = vsub.s32 3, %v185_v6  ;;  %v195_v10 = vsub.s32 1, %v185_v6  ;;  %s453_s18 = scalar_lea.vmem %s720_s29, 128  ;;  %p783_p9 = scmp.ne.s32.totalorder %s778_s25, 0 }
  0x44   : > { %421 = vset.pattern.permute.xlu1 %v556_v3  ;;  %419 = vset.pattern.permute.xlu0 %v557_v4  ;;  %p454_p8 = scmp.ne.s32.totalorder %s720_s29, %s453_s18  ;;  %s558_s23 = smov [#allocation5]  }
  0x45   : > { %208 = vperm.xlu1 %421, %v177_v2   ;;  %190 = vperm.xlu0 %419, %v177_v2   ;;  %v205_v14 = vrot.slane %v178_v11, %v204_v7  ;;  %v187_v15 = vrot.slane %v178_v11, %v186_v8  ;;  %v214_v16 = vrot.slane %v178_v11, %v213_v9  ;;  %s457_s3 = sshll.u32 %s558_s23, 4  ;;  %s458_s3 = int_to_ptr.vmem [resolvable:$false] %s457_s3 }
  0x46   : > { %v196_v17 = vrot.slane %v178_v11, %v195_v10  ;;  %p455_p12 = pnand %p454_p8, %p783_p9  ;;  %s459_s4 = scalar_lea.vmem %s458_s3, 256 }
  0x47   : > { %p460_p7 = scmp.lt.s32.totalorder %s720_s29, %s458_s3  ;;  %p461_p13 = scmp.lt.s32.totalorder %s459_s4, %s453_s18 }
  0x48   : > { %p456_p0 = pneg %p455_p12 }
  0x49   : > { %422 = vset.pattern.permute.xlu0 %v556_v3  ;;  %p462_p4 = por %p461_p13, %p460_p7 }
  0x4b   : > { %p463_p6 = pnand %p462_p4, %p456_p0 }
  0xbf   : > { %v200_v12 = vpop.permute.xlu1 %199  ;;  %v182_v13 = vpop.permute.xlu0 %181 }
  0xc0   : > { %v206_v20 = vmul.f32 %v205_v14, %v200_v12  ;;  %v188_v21 = vmul.f32 %v187_v15, %v182_v13 }
  0xc4   : > { %v209_v18 = vpop.permute.xlu1 %208  ;;  %v191_v19 = vpop.permute.xlu0 %190 }
  0xc5   : > { %v215_v22 = vmul.f32 %v214_v16, %v209_v18  ;;  %v197_v23 = vmul.f32 %v196_v17, %v191_v19 }
  0xc7   : > { %v217_v24 = vadd.f32 %v215_v22, %v206_v20  ;;  %v216_v25 = vadd.f32 %v197_v23, %v188_v21 }
  0xc9   : > { %v218_v26 = vadd.f32 %v217_v24, %v216_v25 }
  0xcb   : > { %219 = vst [vmem:[%s176_s6] sm:$0xff] %v218_v26 }
  0xcc   : > { %466 = shalt.err (!%p463_p6)
}
  0xcd   : > { %s467_s27 = scalar_lea.hbm %s718_s17, 128  ;;  %s471_s24 = scalar_lea.hbm %s774_s2, 512 }
  0xce   : > { %p468_p3 = scmp.ne.s32.totalorder %s718_s17, %s467_s27  ;;  %p472_p1 = scmp.lt.u32.totalorder %s718_s17, %s774_s2 }
  0xcf   : > { %p473_p2 = scmp.lt.u32.totalorder %s471_s24, %s467_s27  ;;  %p475_p8 = scmp.lt.u32.totalorder %s467_s27, %s718_s17 }
  0xd0   : > { %p469_p10 = pnand %p468_p3, %p783_p9 }
  0xd1   : > { %p474_p5 = por %p473_p2, %p472_p1 }
  0xd2   : > { %p470_p11 = pneg %p469_p10 }
  0xd3   : > { %p476_p12 = por %p475_p8, %p474_p5 }
  0xd5   : > { %p477_p0 = pnand %p476_p12, %p470_p11 }
  0xd7   : > { %480 = shalt.err (!%p477_p0)
}
  0xd8   : > { %338 = dma.vmem_to_hbm [thread:$0]  (%p783_p9), %s720_s29, 128, %s718_s17, %s221_s12  }
  0xd9 PF: > { %p349_p7 = scmp.ge.s32.totalorder %s551_s16, 2  ;;  %s248_s5 = sand.u32 1, %s523_s9  }
  0xda   : > { %p784_p13 = scmp.ne.s32.totalorder %s779_s28, 0  ;;  %s249_s6 = scalar_lea.sflag [#allocation4], %s248_s5 }
  0xdc   : > { %p345_p4 = pnand %p349_p7, %p784_p13 }
  0xde   : > { %518 = dma.done.wait (!%p345_p4), %s249_s6, 128  }
  0xdf   : > { %520 = vsyncadd (!%p345_p4), %s249_s6, 4294967168  ;;  %s18_s16 = sadd.s32 1, %s551_s16   ;;  %s785_s9 = smov %s527_s10 }
  0xe0   : > { %p15_p6 = scmp.ge.s32.totalorder %s18_s16, 6   ;;  %s786_s10 = smov %s531_s11 }
  0xe1   : > { %s787_s11 = smov %s652_s30  ;;  %s788_s12 = smov %s543_s14 }
  0xe2   : > { %s789_s13 = smov %s547_s15  ;;  %s790_s14 = smov %s793_s19 }
  0xe3   : > { %s791_s15 = smov %s797_s20  ;;  %17 = sbr.rel (!%p15_p6) target bundleno = 7 (0x7), region = 73 }
  0xea   :  { %254 = vsyncpa [#allocation3], 1 }
  0xeb   :  { %256 = vsyncpa [#allocation3 + $0x1], 1 }
  0xec   :  { %257 = vsyncpa [#allocation4], 1 }
  0xed   :  { %259 = vsyncpa [#allocation4 + $0x1], 1 }

</bundles_post_ra>
